<compile_context>
chip_gen: v7x
topology: tpu7x:2x2x1
jax: 0.10.0
libtpu: 0.0.40
codegen_flags: <defaults>
</compile_context>

<pallas_src>
import numpy as np
import jax
import jax.numpy as jnp
from jax.experimental import pallas as pl
from jax.experimental.pallas import tpu as pltpu


def _round_up(x, m):
    return ((x + m - 1) // m) * m


def _pick_tile(dim_p, target, granule):
    """Largest multiple of `granule` that divides `dim_p` and is <= max(target, granule).

    `dim_p` must itself be a multiple of `granule` (so `granule` always qualifies).
    """
    target = max(int(target), granule)
    best = granule
    d = granule
    limit = min(target, dim_p)
    while d <= limit:
        if dim_p % d == 0:
            best = d
        d += granule
    return best


def _hw_config():
    """Per-generation tile targets / VMEM budgets."""
    kind = ""
    try:
        kind = jax.devices()[0].device_kind.lower()
    except Exception:
        pass
    if "v5" in kind and ("lite" in kind or "5e" in kind):
        # v5e: 16 MiB scoped-VMEM default -> bump it; moderate tiles (4x128^2 MXU).
        return dict(tm=512, tn=512, vmem_budget=24 << 20,
                    vmem_limit=64 << 20, num_tc=1)
    if "v7" in kind or "7x" in kind:
        # v7x: 64 MiB physical VMEM, 2 TensorCores -> tighter budget, >=2 blocks.
        return dict(tm=512, tn=512, vmem_budget=20 << 20,
                    vmem_limit=None, num_tc=2)
    # v6e (and default): 128 MiB VMEM, HBM-reuse wants bigger tiles.
    return dict(tm=512, tn=1024, vmem_budget=24 << 20,
                vmem_limit=None, num_tc=1)


# ----------------------------- kernels -----------------------------

def _dense_kernel_single(x_ref, w_ref, o_ref):
    """Whole K reduction in one grid step: no init/finalize guards needed."""
    o_ref[...] = jnp.dot(
        x_ref[...], w_ref[...], preferred_element_type=jnp.float32
    ).astype(o_ref.dtype)


def _dense_kernel_f32_acc_out(x_ref, w_ref, o_ref):
    """f32 output: accumulate directly into the resident output block (no scratch)."""
    @pl.when(pl.program_id(2) == 0)
    def _():
        o_ref[...] = jnp.zeros_like(o_ref)

    o_ref[...] += jnp.dot(
        x_ref[...], w_ref[...], preferred_element_type=jnp.float32
    )


def _dense_kernel_scratch_acc(x_ref, w_ref, o_ref, acc_ref):
    """Low-precision output: accumulate in f32 scratch, cast once on the last K step."""
    @pl.when(pl.program_id(2) == 0)
    def _():
        acc_ref[...] = jnp.zeros_like(acc_ref)

    acc_ref[...] += jnp.dot(
        x_ref[...], w_ref[...], preferred_element_type=jnp.float32
    )

    @pl.when(pl.program_id(2) == pl.num_programs(2) - 1)
    def _():
        o_ref[...] = acc_ref[...].astype(o_ref.dtype)


# ----------------------------- weight preparation -----------------------------

def prepare_dense_weight(w, compute_dtype=jnp.bfloat16):
    """One-time (out of the hot path) cast + pad of the constant weight.

    Pads K and N to multiples of 128 (lane-dense) and casts to the compute dtype so
    dense_forward does not re-stream the f32 weight through HBM on every call.
    """
    K, N = w.shape
    Kp = _round_up(K, 128)
    Np = _round_up(N, 128)
    wc = w.astype(compute_dtype)
    if (Kp, Np) != (K, N):
        wc = jnp.pad(wc, ((0, Kp - K), (0, Np - N)))
    return wc


# ----------------------------- wrapper -----------------------------

def dense_forward(x, w, *, fmaps_out=None, compute_dtype=jnp.bfloat16,
                  tm=None, tn=None):
    """x: [N, ...] (flattened to [N, K]),  w: [K(, padded), Nout(, padded)]  ->  [N, Nout].

    `w` may be the raw [fmaps_in, fmaps_out] weight or a `prepare_dense_weight` output
    (already cast to compute_dtype and padded to 128-multiples).  `fmaps_out` is the
    logical output width (defaults to w.shape[1]).
    """
    cfg = _hw_config()
    out_dtype = x.dtype

    M = x.shape[0]
    x2 = x.reshape(M, -1)                    # torch .view([-1, prod(shape[1:])])
    K = x2.shape[1]
    Kw, Nw = w.shape
    N = int(fmaps_out) if fmaps_out is not None else Nw

    comp_isz = jnp.dtype(compute_dtype).itemsize
    out_isz = jnp.dtype(out_dtype).itemsize
    sub = 16 if comp_isz == 2 else 8         # bf16 packs 16 rows / vreg

    # Pad only to hardware granularity (sublane / lane), never to tile multiples.
    Mp = _round_up(M, sub)
    Kp = _round_up(K, 128)
    Np = _round_up(N, 128)
    assert Kw in (K, Kp), (Kw, K, Kp)
    assert Nw in (N, Np), (Nw, N, Np)

    # Weight: skip cast/pad if already prepared.
    wc = w if w.dtype == jnp.dtype(compute_dtype) else w.astype(compute_dtype)
    if (Kw, Nw) != (Kp, Np):
        wc = jnp.pad(wc, ((0, Kp - Kw), (0, Np - Nw)))

    # Activations (change every call; cast/pad fuses into the call via allow_input_fusion).
    xc = x2 if x2.dtype == jnp.dtype(compute_dtype) else x2.astype(compute_dtype)
    if (Mp, Kp) != (M, K):
        xc = jnp.pad(xc, ((0, Mp - M), (0, Kp - K)))

    # ---- tile selection: divisors of the padded dims ----
    tm = _pick_tile(Mp, tm if tm is not None else cfg["tm"], sub)
    tn = _pick_tile(Np, tn if tn is not None else cfg["tn"], 128)

    # v7x: guarantee >=2 parallel output blocks so both TensorCores get work.
    if cfg["num_tc"] > 1 and (Mp // tm) * (Np // tn) == 1:
        if Np // 128 >= 2:
            tn = _pick_tile(Np, Np // 2, 128)
        elif Mp // sub >= 2:
            tm = _pick_tile(Mp, Mp // 2, sub)

    # tk: as large as the VMEM budget allows (full K whenever it fits).
    fixed_bytes = 2 * tm * tn * out_isz                      # double-buffered output
    if out_dtype != jnp.float32:
        fixed_bytes += tm * tn * 4                           # f32 scratch accumulator
    per_k_bytes = 2 * (tm + tn) * comp_isz                   # double-buffered x & w tiles
    tk_max = max(128, (cfg["vmem_budget"] - fixed_bytes) // per_k_bytes)
    tk = _pick_tile(Kp, min(tk_max, Kp), 128)

    grid = (Mp // tm, Np // tn, Kp // tk)
    nk = grid[2]

    in_specs = [
        pl.BlockSpec((tm, tk), lambda i, j, k: (i, k)),       # x K-slice
        pl.BlockSpec((tk, tn), lambda i, j, k: (k, j)),       # w K-slice
    ]
    out_specs = pl.BlockSpec((tm, tn), lambda i, j, k: (i, j))  # resident across K

    if nk == 1:
        kernel = _dense_kernel_single
        scratch_shapes = []
    elif out_dtype == jnp.float32:
        kernel = _dense_kernel_f32_acc_out
        scratch_shapes = []
    else:
        kernel = _dense_kernel_scratch_acc
        scratch_shapes = [pltpu.VMEM((tm, tn), jnp.float32)]

    cost = pl.CostEstimate(
        flops=2 * Mp * Np * Kp,
        bytes_accessed=Mp * Kp * comp_isz + Kp * Np * comp_isz + Mp * Np * out_isz,
        transcendentals=0,
    )

    out_p = pl.pallas_call(
        kernel,
        out_shape=jax.ShapeDtypeStruct((Mp, Np), out_dtype),
        grid_spec=pltpu.PrefetchScalarGridSpec(
            num_scalar_prefetch=0,
            grid=grid,
            in_specs=in_specs,
            out_specs=out_specs,
            scratch_shapes=scratch_shapes,
        ),
        compiler_params=pltpu.CompilerParams(
            dimension_semantics=("parallel", "parallel", "arbitrary"),
            vmem_limit_bytes=cfg["vmem_limit"],
            allow_input_fusion=[True, True],
        ),
        cost_estimate=cost,
    )(xc, wc)

    if (Mp, Np) != (M, N):
        out_p = out_p[:M, :N]
    return out_p


# ----------------------------- weight init -----------------------------

def init_dense_weight(key, shape_in, fmaps_out, gain=np.sqrt(2), use_wscale=False, lrmul=1):
    """Deterministic re-implementation of get_weight([fmaps_out, fmaps_in]).permute([1,0])."""
    if isinstance(shape_in, (int, np.integer)):
        fmaps_in = int(shape_in)
    elif len(shape_in) > 2:
        fmaps_in = int(np.prod([d for d in shape_in[:]]))
    else:
        fmaps_in = int(shape_in[1])

    he_std = gain / np.sqrt(fmaps_in)
    if use_wscale:
        init_std = 1.0 / lrmul
        runtime_coef = he_std * lrmul
    else:
        init_std = he_std / lrmul
        runtime_coef = lrmul

    w_out_in = jax.random.normal(key, (fmaps_out, fmaps_in), jnp.float32) * init_std * runtime_coef
    return jnp.transpose(w_out_in, (1, 0))   # [fmaps_in, fmaps_out]


if __name__ == "__main__":
    key = jax.random.PRNGKey(0)
    kx, kw = jax.random.split(key)

    # Small shapes: x is NCHW (2, 4, 16, 16); shape_in=(4,16,16) -> fmaps_in = 1024
    batch, C, H, W = 2, 4, 16, 16
    shape_in = (C, H, W)
    fmaps_out = 32

    x = jax.random.normal(kx, (batch, C, H, W), jnp.float32)
    w = init_dense_weight(kw, shape_in, fmaps_out)          # [1024, 32]

    # Prepare the constant weight ONCE (cast to bf16 + pad to lane multiples) so the
    # per-call hot path does not re-stream the f32 weight through HBM.
    w_prep = jax.block_until_ready(prepare_dense_weight(w))

    dense_fn = jax.jit(lambda xx, ww: dense_forward(xx, ww, fmaps_out=fmaps_out))
    out = dense_fn(x, w_prep)
    out = jax.block_until_ready(out)
    assert out.shape == (batch, fmaps_out), out.shape

    # Reference checks in plain JAX.
    x2 = x.reshape(batch, -1)
    # Same bf16 compute dtype as the kernel -> tight tolerance.
    ref_bf16 = jnp.dot(x2.astype(jnp.bfloat16), w.astype(jnp.bfloat16),
                       preferred_element_type=jnp.float32)
    np.testing.assert_allclose(np.asarray(out), np.asarray(ref_bf16), rtol=1e-3, atol=1e-3)
    # Full-precision reference -> loose tolerance (bf16 input quantization).
    ref_f32 = x2 @ w
    np.testing.assert_allclose(np.asarray(out), np.asarray(ref_f32), rtol=5e-2, atol=5e-2)

    # Also exercise the raw (unprepared) weight path.
    out2 = jax.block_until_ready(dense_forward(x, w))
    np.testing.assert_allclose(np.asarray(out2), np.asarray(ref_bf16), rtol=1e-3, atol=1e-3)

    print("KERNEL_OK")
</pallas_src>

<mosaic_0001>
module attributes {stable_mosaic.version = 11 : i64} {
  func.func @_dense_kernel_single(%arg0: i32, %arg1: i32, %arg2: i32, %arg3: memref<16x1024xbf16, #tpu.memory_space<vmem>>, %arg4: memref<1024x128xbf16, #tpu.memory_space<vmem>>, %arg5: memref<16x128xf32, #tpu.memory_space<vmem>>) attributes {dimension_semantics = [#tpu.dimension_semantics<parallel>, #tpu.dimension_semantics<parallel>, #tpu.dimension_semantics<arbitrary>], iteration_bounds = array<i64: 1, 1, 1>, scalar_prefetch = 0 : i64, scratch_operands = 0 : i64, tpu.core_type = #tpu.core_type<tc>, window_params = [{transform_indices = @transform_0, window_bounds = array<i64: 16, 1024>}, {transform_indices = @transform_1, window_bounds = array<i64: 1024, 128>}, {transform_indices = @transform_2, window_bounds = array<i64: 16, 128>}]} {
    %c0 = arith.constant 0 : index
    %c0_0 = arith.constant 0 : index
    %0 = vector.load %arg3[%c0, %c0_0] : memref<16x1024xbf16, #tpu.memory_space<vmem>>, vector<16x1024xbf16>
    %c0_1 = arith.constant 0 : index
    %c0_2 = arith.constant 0 : index
    %1 = vector.load %arg4[%c0_1, %c0_2] : memref<1024x128xbf16, #tpu.memory_space<vmem>>, vector<1024x128xbf16>
    %cst = arith.constant dense<0.000000e+00> : vector<16x128xf32>
    %2 = tpu.matmul %0, %1, %cst {dimension_numbers = #tpu.dot_dimension_numbers<[1], [0], [0], [1], [0, 0, 1, 1], [], []>} : vector<16x1024xbf16>, vector<1024x128xbf16>, vector<16x128xf32> -> vector<16x128xf32>
    %c0_3 = arith.constant 0 : index
    %c0_4 = arith.constant 0 : index
    %3 = vector.load %arg5[%c0_3, %c0_4] : memref<16x128xf32, #tpu.memory_space<vmem>>, vector<16x128xf32>
    tpu.vector_store %arg5[%c0_3, %c0_4], %2 {strides = array<i32>} : memref<16x128xf32, #tpu.memory_space<vmem>>, vector<16x128xf32>,
    return
  }
  func.func @transform_0(%arg0: i32, %arg1: i32, %arg2: i32) -> (i32, i32) {
    %c0_i32 = arith.constant 0 : i32
    return %arg0, %arg2 : i32, i32
  }
  func.func @transform_1(%arg0: i32, %arg1: i32, %arg2: i32) -> (i32, i32) {
    %c0_i32 = arith.constant 0 : i32
    return %arg2, %arg1 : i32, i32
  }
  func.func @transform_2(%arg0: i32, %arg1: i32, %arg2: i32) -> (i32, i32) {
    %c0_i32 = arith.constant 0 : i32
    return %arg0, %arg1 : i32, i32
  }
}

</mosaic_0001>

<bundles_post_ra>
// kernel: _lambda_.2
= control target key start
LH: loop header
LB: loop body
LE: loop exit
PB: predicated region body
PF: predicated region fallthrough
CT: control target
= control target key end

     0   :  { %s1318_s0 = inlined_call_operand.hbm [shape: bf16[1024,128], index: 0, kind: input, shape index: {}]   ;;  %s1319_s1 = inlined_call_operand.vmem [shape: bf16[2,1024], index: 1, kind: input, shape index: {}]   ;;  %s1320_s2 = inlined_call_operand.<no memory space> [shape: bf16[], index: 2, kind: input, shape index: {}]   ;;  %s1321_s3 = inlined_call_operand.vmem [shape: f32[16,128], index: 3, kind: output, shape index: {}]  }
   0x1   :  { %v8_v0 = vstv %s1320_s2 }
   0x2   :  { %v1227_v1 = vunpack.i.l.bf16 %v8_v0 }
   0x3   :  { %13 = vsyncpa [#allocation8], 0  ;;  %s1200_s14 = smov [#allocation7]   ;;  %s1176_s18 = scalar_lea.hbm %s1318_s0, 8192 }
   0x4   :  { %s21_s15 = sshll.u32 %s1200_s14, 4  ;;  %p1177_p0 = scmp.ne.s32.totalorder %s1318_s0, %s1176_s18  ;;  %s22_s15 = int_to_ptr.vmem [resolvable:$true] %s21_s15 }
   0x5   :  { %p1180_p1 = scmp.lt.u32.totalorder %s1176_s18, %s1318_s0 }
   0x7   :  { %p1182_p2 = pnand %p1180_p1, %p1177_p0 }
   0x9   :  { %1185 = shalt.err (!%p1182_p2)
}
   0xa   :  { %s1186_s2 = scalar_lea.vmem %s22_s15, 8192  ;;  %p1191_p4 = scmp.lt.s32.totalorder %s22_s15, %s22_s15 }
   0xb   :  { %p1187_p3 = scmp.ne.s32.totalorder %s22_s15, %s1186_s2  ;;  %p1192_p5 = scmp.lt.s32.totalorder %s1186_s2, %s1186_s2 }
   0xd   :  { %p1193_p6 = por %p1192_p5, %p1191_p4 }
   0xf   :  { %p1194_p7 = pnand %p1193_p6, %p1187_p3 }
  0x11   :  { %1197 = shalt.err (!%p1194_p7)
}
  0x12   :  { %s1201_s23 = smov 64   ;;  %s1202_s24 = smov 4  }
  0x13   :  { %27 = dma.hbm_to_vmem [thread:$0]  %s1318_s0, 8192, %s22_s15, [#allocation8], %s1201_s23, %s1201_s23, %s1202_s24  }
  0x14   :  { %1198 = dma.done.wait [#allocation8], 8192  }
  0x15   :  { %1199 = vsyncadd [#allocation8], 4294959104  ;;  %v1243_v2 = vpack.c.bf16 %v1227_v1, %v1227_v1  ;;  %v1112_v3 = vld [vmem:[#allocation7 + $0x40] sm:$0xff]   ;;  %v1116_v7 = vld [vmem:[#allocation7 + $0x48] sm:$0xff]   ;;  %v37_v27 = vlaneseq  ;;  %v1203_v50 = vmov 0.0  }
  0x16   :  { %v1113_v4 = vld [vmem:[#allocation7 + $0xc0] sm:$0xff]   ;;  %1020 = vmatprep.subr.bf16.mxu0 %v1112_v3  ;;  %v1117_v8 = vld [vmem:[#allocation7 + $0xc8] sm:$0xff]   ;;  %v1120_v11 = vld [vmem:[#allocation7 + $0x50] sm:$0xff]  }
  0x17   :  { %v1114_v5 = vld [vmem:[#allocation7] sm:$0xff]   ;;  %1042 = vmatprep.subr.bf16.mxu1 %v1113_v4  ;;  %v1118_v9 = vld [vmem:[#allocation7 + $0x8] sm:$0xff]   ;;  %v1121_v12 = vld [vmem:[#allocation7 + $0xd0] sm:$0xff]   ;;  %v1245_v32 = vshrl.u32 %v37_v27, 7 }
  0x18   :  { %v1115_v6 = vld [vmem:[#allocation7 + $0x80] sm:$0xff]   ;;  %1021 = vmatpush3.bf16.msra.mxu0 %v1114_v5  ;;  %v1119_v10 = vld [vmem:[#allocation7 + $0x88] sm:$0xff]   ;;  %v1122_v13 = vld [vmem:[#allocation7 + $0x10] sm:$0xff]  }
  0x19   :  { %1043 = vmatpush3.bf16.msra.mxu1 %v1115_v6  ;;  %1022 = vmatprep.subr.bf16.mxu0 %v1116_v7  ;;  %v1123_v14 = vld [vmem:[#allocation7 + $0x90] sm:$0xff]   ;;  %v1124_v15 = vld [vmem:[#allocation7 + $0x58] sm:$0xff]   ;;  %v1128_v19 = vld [vmem:[#allocation7 + $0x60] sm:$0xff]   ;;  %vm40_vm0 = vcmp.lt.s32.totalorder %v1245_v32, 2 }
  0x1a   :  { %1044 = vmatprep.subr.bf16.mxu1 %v1117_v8  ;;  %v1125_v16 = vld [vmem:[#allocation7 + $0xd8] sm:$0xff]   ;;  %v1129_v20 = vld [vmem:[#allocation7 + $0xe0] sm:$0xff]   ;;  %v1132_v23 = vld [vmem:[#allocation7 + $0x68] sm:$0xff]  }
  0x1b   :  { %v1126_v17 = vld [vmem:[#allocation7 + $0x18] sm:$0xff]   ;;  %v1130_v21 = vld [vmem:[#allocation7 + $0x20] sm:$0xff]   ;;  %v1133_v24 = vld [vmem:[#allocation7 + $0xe8] sm:$0xff]  }
  0x1c   :  { %1023 = vmatpush3.bf16.msra.mxu0 %v1118_v9  ;;  %v1127_v18 = vld [vmem:[#allocation7 + $0x98] sm:$0xff]   ;;  %v1131_v22 = vld [vmem:[#allocation7 + $0xa0] sm:$0xff]   ;;  %v1134_v25 = vld [vmem:[#allocation7 + $0x28] sm:$0xff]  }
  0x1d   :  { %1045 = vmatpush3.bf16.msra.mxu1 %v1119_v10  ;;  %1024 = vmatprep.subr.bf16.mxu0 %v1120_v11  ;;  %v1135_v26 = vld [vmem:[#allocation7 + $0xa8] sm:$0xff]   ;;  %v1136_v28 = vld [vmem:[#allocation7 + $0x70] sm:$0xff]   ;;  %v1140_v33 = vld [vmem:[#allocation7 + $0x78] sm:$0xff]  }
  0x1e   :  { %1046 = vmatprep.subr.bf16.mxu1 %v1121_v12  ;;  %v1137_v29 = vld [vmem:[#allocation7 + $0xf0] sm:$0xff]   ;;  %v1141_v34 = vld [vmem:[#allocation7 + $0xf8] sm:$0xff]   ;;  %v34_v37 = vld [vmem:[%s1319_s1] sm:$0x1] }
  0x1f   :  { %v1138_v30 = vld [vmem:[#allocation7 + $0x30] sm:$0xff]   ;;  %v1142_v35 = vld [vmem:[#allocation7 + $0x38] sm:$0xff]   ;;  %v921_v38 = vld [vmem:[%s1319_s1 + $0x1] sm:$0x1]  ;;  %v35_v40 = vunpack.c.l.bf16 %v34_v37 }
  0x20   :  { %1025 = vmatpush3.bf16.msra.mxu0 %v1122_v13  ;;  %v1139_v31 = vld [vmem:[#allocation7 + $0xb0] sm:$0xff]   ;;  %v1143_v36 = vld [vmem:[#allocation7 + $0xb8] sm:$0xff]   ;;  %v922_v39 = vld [vmem:[%s1319_s1 + $0x2] sm:$0x1]  ;;  %v50_v41 = vunpack.c.l.bf16 %v921_v38 }
  0x21   :  { %1047 = vmatpush3.bf16.msra.mxu1 %v1123_v14  ;;  %1026 = vmatprep.subr.bf16.mxu0 %v1124_v15  ;;  %v66_v42 = vunpack.c.l.bf16 %v922_v39  ;;  %v923_v43 = vld [vmem:[%s1319_s1 + $0x3] sm:$0x1]  ;;  %v41_v46 = vsel %vm40_vm0, %v35_v40, %v1227_v1  ;;  %v1148_v0 = vld [vmem:[#allocation7 + $0x148] sm:$0xff]   ;;  %v1152_v6 = vld [vmem:[#allocation7 + $0x150] sm:$0xff]  }
  0x22   :  { %1048 = vmatprep.subr.bf16.mxu1 %v1125_v16  ;;  %v82_v44 = vunpack.c.l.bf16 %v923_v43  ;;  %v1144_v45 = vld [vmem:[#allocation7 + $0x140] sm:$0xff]   ;;  %v56_v47 = vsel %vm40_vm0, %v50_v41, %v1227_v1  ;;  %v42_v51 = vpack.c.bf16 %v1203_v50, %v41_v46  ;;  %v1149_v3 = vld [vmem:[#allocation7 + $0x1c8] sm:$0xff]   ;;  %v1153_v7 = vld [vmem:[#allocation7 + $0x1d0] sm:$0xff]  }
  0x23   :  { %v72_v48 = vsel %vm40_vm0, %v66_v42, %v1227_v1  ;;  %v1145_v49 = vld [vmem:[#allocation7 + $0x1c0] sm:$0xff]   ;;  %v58_v52 = vpack.c.bf16 %v1203_v50, %v56_v47  ;;  %v1150_v4 = vld [vmem:[#allocation7 + $0x108] sm:$0xff]   ;;  %v1154_v8 = vld [vmem:[#allocation7 + $0x110] sm:$0xff]  }
  0x24   :  { %1027 = vmatpush3.bf16.msra.mxu0 %v1126_v17  ;;  %v74_v53 = vpack.c.bf16 %v1203_v50, %v72_v48  ;;  %v88_v54 = vsel %vm40_vm0, %v82_v44, %v1227_v1  ;;  %44 = vst [vmem:[#allocation9] sm:$0xf] %v42_v51  ;;  %v1146_v57 = vld [vmem:[#allocation7 + $0x100] sm:$0xff]   ;;  %v1151_v5 = vld [vmem:[#allocation7 + $0x188] sm:$0xff]   ;;  %v1155_v9 = vld [vmem:[#allocation7 + $0x190] sm:$0xff]  }
  0x25   :  { %1049 = vmatpush3.bf16.msra.mxu1 %v1127_v18  ;;  %1028 = vmatprep.subr.bf16.mxu0 %v1128_v19  ;;  %v90_v55 = vpack.c.bf16 %v1203_v50, %v88_v54  ;;  %60 = vst [vmem:[#allocation9 + $0x4] sm:$0xf] %v58_v52  ;;  %v1147_v61 = vld [vmem:[#allocation7 + $0x180] sm:$0xff]   ;;  %v1156_v10 = vld [vmem:[#allocation7 + $0x158] sm:$0xff]   ;;  %v1164_v18 = vld [vmem:[#allocation7 + $0x168] sm:$0xff]  }
  0x26   :  { %1050 = vmatprep.subr.bf16.mxu1 %v1129_v20  ;;  %76 = vst [vmem:[#allocation9 + $0x8] sm:$0xf] %v74_v53  ;;  %v1157_v11 = vld [vmem:[#allocation7 + $0x1d8] sm:$0xff]   ;;  %v1160_v14 = vld [vmem:[#allocation7 + $0x160] sm:$0xff]   ;;  %v1165_v19 = vld [vmem:[#allocation7 + $0x1e8] sm:$0xff]  }
  0x27   :  { %92 = vst [vmem:[#allocation9 + $0xc] sm:$0xf] %v90_v55  ;;  %v1158_v12 = vld [vmem:[#allocation7 + $0x118] sm:$0xff]   ;;  %v1161_v15 = vld [vmem:[#allocation7 + $0x1e0] sm:$0xff]   ;;  %v1166_v20 = vld [vmem:[#allocation7 + $0x128] sm:$0xff]  }
  0x28   :  { %1029 = vmatpush3.bf16.msra.mxu0 %v1130_v21  ;;  %v1159_v13 = vld [vmem:[#allocation7 + $0x198] sm:$0xff]   ;;  %v1162_v16 = vld [vmem:[#allocation7 + $0x120] sm:$0xff]   ;;  %v1171_v41 = vld [vmem:[#allocation7 + $0x1b0] sm:$0xff]  }
  0x29   :  { %1051 = vmatpush3.bf16.msra.mxu1 %v1131_v22  ;;  %1030 = vmatprep.subr.bf16.mxu0 %v1132_v23  ;;  %v1163_v17 = vld [vmem:[#allocation7 + $0x1a0] sm:$0xff]   ;;  %v1172_v42 = vld [vmem:[#allocation7 + $0x178] sm:$0xff]  }
  0x2a   :  { %1052 = vmatprep.subr.bf16.mxu1 %v1133_v24  ;;  %v924_v21 = vld [vmem:[%s1319_s1 + $0x4] sm:$0x1]  ;;  %v925_v22 = vld [vmem:[%s1319_s1 + $0x5] sm:$0x1]  ;;  %v926_v23 = vld [vmem:[%s1319_s1 + $0x6] sm:$0x1] }
  0x2b   :  { %v1167_v24 = vld [vmem:[#allocation7 + $0x1a8] sm:$0xff]   ;;  %v114_v27 = vunpack.c.l.bf16 %v925_v22  ;;  %v1173_v44 = vld [vmem:[#allocation7 + $0x1f8] sm:$0xff]  }
  0x2c   :  { %1031 = vmatpush3.bf16.msra.mxu0 %v1134_v25  ;;  %v190_v56 = vld [vmem:[#allocation9] sm:$0xff]  ;;  %v1168_v25 = vld [vmem:[#allocation7 + $0x170] sm:$0xff]   ;;  %v1175_v46 = vld [vmem:[#allocation7 + $0x1b8] sm:$0xff]  }
  0x2d   :  { %1053 = vmatpush3.bf16.msra.mxu1 %v1135_v26  ;;  %1032 = vmatprep.subr.bf16.mxu0 %v1136_v28  ;;  %v928_v58 = vcombine.low %v190_v56, %v1243_v2  ;;  %v929_v59 = vcombine.high %v190_v56, %v1243_v2  ;;  %v98_v26 = vunpack.c.l.bf16 %v924_v21  ;;  %v130_v28 = vunpack.c.l.bf16 %v926_v23 }
  0x2e   :  { %1054 = vmatprep.subr.bf16.mxu1 %v1137_v29  ;;  %v191_v60 = vld [vmem:[#allocation9 + $0x8] sm:$0xff]  ;;  %v927_v29 = vld [vmem:[%s1319_s1 + $0x7] sm:$0x1] }
  0x2f   :  { %v930_v62 = vcombine.low %v191_v60, %v1243_v2  ;;  %v931_v63 = vcombine.high %v191_v60, %v1243_v2  ;;  %782 = vmatprep.mubr.bf16.mxu0 %v929_v59 }
  0x30   :  { %1033 = vmatpush3.bf16.msra.mxu0 %v1138_v30  ;;  %v1169_v30 = vld [vmem:[#allocation7 + $0x1f0] sm:$0xff]  }
  0x31   :  { %1055 = vmatpush3.bf16.msra.mxu1 %v1139_v31  ;;  %1034 = vmatprep.subr.bf16.mxu0 %v1140_v33  ;;  %v146_v31 = vunpack.c.l.bf16 %v927_v29  ;;  %v104_v33 = vsel %vm40_vm0, %v98_v26, %v1227_v1 }
  0x32   :  { %1056 = vmatprep.subr.bf16.mxu1 %v1141_v34  ;;  %823 = vmatprep.mubr.bf16.mxu1 %v931_v63  ;;  %v120_v34 = vsel %vm40_vm0, %v114_v27, %v1227_v1  ;;  %v106_v37 = vpack.c.bf16 %v1203_v50, %v104_v33 }
  0x33   :  { %v122_v38 = vpack.c.bf16 %v1203_v50, %v120_v34  ;;  %v152_v40 = vsel %vm40_vm0, %v146_v31, %v1227_v1 }
  0x34   :  { %1035 = vmatpush3.bf16.msra.mxu0 %v1142_v35  ;;  %v136_v35 = vsel %vm40_vm0, %v130_v28, %v1227_v1  ;;  %v154_v43 = vpack.c.bf16 %v1203_v50, %v152_v40  ;;  %108 = vst [vmem:[#allocation9 + $0x10] sm:$0xf] %v106_v37 }
  0x35   :  { %1057 = vmatpush3.bf16.msra.mxu1 %v1143_v36  ;;  %1064 = vmatprep.subr.bf16.mxu0 %v1144_v45  ;;  %v1170_v36 = vld [vmem:[#allocation7 + $0x130] sm:$0xff]   ;;  %v138_v39 = vpack.c.bf16 %v1203_v50, %v136_v35  ;;  %124 = vst [vmem:[#allocation9 + $0x14] sm:$0xf] %v122_v38  ;;  %v1174_v45 = vld [vmem:[#allocation7 + $0x138] sm:$0xff]  }
  0x36   :  { %1086 = vmatprep.subr.bf16.mxu1 %v1145_v49  ;;  %156 = vst [vmem:[#allocation9 + $0x1c] sm:$0xf] %v154_v43 }
  0x37   :  { %783 = vmatmul.mubr.bf16.vlgmr.msra.gmra.mrb[0].mxu0 %v928_v58  ;;  %140 = vst [vmem:[#allocation9 + $0x18] sm:$0xf] %v138_v39 }
  0x38   :  { %824 = vmatmul.mubr.bf16.vlgmr.msra.gmra.mrb[0].mxu1 %v930_v62  ;;  %1065 = vmatpush3.bf16.msra.mxu0 %v1146_v57 }
  0x39   :  { %1087 = vmatpush3.bf16.msra.mxu1 %v1147_v61  ;;  %1066 = vmatprep.subr.bf16.mxu0 %v1148_v0 }
  0x3a   :  { %1088 = vmatprep.subr.bf16.mxu1 %v1149_v3 }
  0x3c   :  { %1067 = vmatpush3.bf16.msra.mxu0 %v1150_v4  ;;  %v192_v1 = vld [vmem:[#allocation9 + $0x10] sm:$0xff] }
  0x3d   :  { %1089 = vmatpush3.bf16.msra.mxu1 %v1151_v5  ;;  %1068 = vmatprep.subr.bf16.mxu0 %v1152_v6  ;;  %v932_v32 = vcombine.low %v192_v1, %v1243_v2  ;;  %v933_v47 = vcombine.high %v192_v1, %v1243_v2 }
  0x3e   :  { %1090 = vmatprep.subr.bf16.mxu1 %v1153_v7  ;;  %v193_v48 = vld [vmem:[#allocation9 + $0x18] sm:$0xff] }
  0x3f   :  { %v934_v49 = vcombine.low %v193_v48, %v1243_v2  ;;  %v935_v50 = vcombine.high %v193_v48, %v1243_v2  ;;  %864 = vmatprep.mubr.bf16.mxu0 %v933_v47 }
  0x40   :  { %1069 = vmatpush3.bf16.msra.mxu0 %v1154_v8 }
  0x41   :  { %1091 = vmatpush3.bf16.msra.mxu1 %v1155_v9  ;;  %1070 = vmatprep.subr.bf16.mxu0 %v1156_v10 }
  0x42   :  { %1092 = vmatprep.subr.bf16.mxu1 %v1157_v11  ;;  %905 = vmatprep.mubr.bf16.mxu1 %v935_v50 }
  0x44   :  { %1071 = vmatpush3.bf16.msra.mxu0 %v1158_v12 }
  0x45   :  { %1093 = vmatpush3.bf16.msra.mxu1 %v1159_v13  ;;  %1072 = vmatprep.subr.bf16.mxu0 %v1160_v14 }
  0x46   :  { %1094 = vmatprep.subr.bf16.mxu1 %v1161_v15 }
  0x48   :  { %1073 = vmatpush3.bf16.msra.mxu0 %v1162_v16 }
  0x49   :  { %1095 = vmatpush3.bf16.msra.mxu1 %v1163_v17  ;;  %1074 = vmatprep.subr.bf16.mxu0 %v1164_v18 }
  0x4a   :  { %1096 = vmatprep.subr.bf16.mxu1 %v1165_v19 }
  0x4c   :  { %1075 = vmatpush3.bf16.msra.mxu0 %v1166_v20 }
  0x4d   :  { %1097 = vmatpush3.bf16.msra.mxu1 %v1167_v24  ;;  %1076 = vmatprep.subr.bf16.mxu0 %v1168_v25 }
  0x4e   :  { %1098 = vmatprep.subr.bf16.mxu1 %v1169_v30 }
  0x50   :  { %1077 = vmatpush3.bf16.msra.mxu0 %v1170_v36 }
  0x51   :  { %1099 = vmatpush3.bf16.msra.mxu1 %v1171_v41  ;;  %1078 = vmatprep.subr.bf16.mxu0 %v1172_v42 }
  0x52   :  { %1100 = vmatprep.subr.bf16.mxu1 %v1173_v44 }
  0x54   :  { %1079 = vmatpush3.bf16.msra.mxu0 %v1174_v45 }
  0x55   :  { %1101 = vmatpush3.bf16.msra.mxu1 %v1175_v46 }
  0x57   :  { %865 = vmatmul.mubr.bf16.vlgmr.msra.gmra.mrb[4].mxu0 %v932_v32 }
  0x58   :  { %906 = vmatmul.mubr.bf16.vlgmr.msra.gmra.mrb[4].mxu1 %v934_v49 }
 0x10a   :  { %v1036_v51 = vpop.f32.mrb[0].mxu0 }
 0x10b   :  { %v1058_v52 = vpop.f32.mrb[0].mxu1  ;;  %v1037_v53 = vpop.f32.mrb[1].mxu0 }
 0x10c   :  { %v1038_v54 = vadd.f32 %v1037_v53, %v1036_v51  ;;  %v1059_v55 = vpop.f32.mrb[1].mxu1  ;;  %v1039_v56 = vpop.f32.mrb[2].mxu0 }
 0x10d   :  { %v1060_v57 = vadd.f32 %v1059_v55, %v1058_v52  ;;  %v1061_v58 = vpop.f32.mrb[2].mxu1  ;;  %v1040_v59 = vpop.f32.mrb[3].mxu0 }
 0x10e   :  { %v1041_v60 = vadd.f32 %v1040_v59, %v1039_v56  ;;  %v1062_v61 = vpop.f32.mrb[3].mxu1 }
 0x10f   :  { %v826_v62 = vadd.f32 %v1060_v57, %v1038_v54  ;;  %v1063_v63 = vadd.f32 %v1062_v61, %v1061_v58 }
 0x111   :  { %v829_v0 = vadd.f32 %v1063_v63, %v1041_v60 }
 0x12a   :  { %v1080_v3 = vpop.f32.mrb[4].mxu0 }
 0x12b   :  { %v1102_v2 = vpop.f32.mrb[4].mxu1  ;;  %v1081_v4 = vpop.f32.mrb[5].mxu0 }
 0x12c   :  { %v1082_v5 = vadd.f32 %v1081_v4, %v1080_v3  ;;  %v1103_v6 = vpop.f32.mrb[5].mxu1  ;;  %v1083_v7 = vpop.f32.mrb[6].mxu0 }
 0x12d   :  { %v1104_v8 = vadd.f32 %v1103_v6, %v1102_v2  ;;  %v1105_v9 = vpop.f32.mrb[6].mxu1  ;;  %v1084_v10 = vpop.f32.mrb[7].mxu0 }
 0x12e   :  { %v867_v11 = vadd.f32 %v1082_v5, %v826_v62  ;;  %v1085_v12 = vadd.f32 %v1084_v10, %v1083_v7  ;;  %v1106_v13 = vpop.f32.mrb[7].mxu1 }
 0x12f   :  { %v1107_v14 = vadd.f32 %v1106_v13, %v1105_v9 }
 0x130   :  { %v908_v15 = vadd.f32 %v1104_v8, %v867_v11  ;;  %v870_v16 = vadd.f32 %v1085_v12, %v829_v0 }
 0x132   :  { %914 = vst [vmem:[%s1321_s3] sm:$0xff] %v908_v15  ;;  %v911_v17 = vadd.f32 %v1107_v14, %v870_v16 }
 0x134   :  { %915 = vst [vmem:[%s1321_s3 + $0x8] sm:$0xff] %v911_v17 }
 0x135   :  { %920 = vsyncpa [#allocation8], 1 }

</bundles_post_ra>
